<compile_context>
chip_gen: v5e
topology: v5e:2x2
jax: 0.10.0
libtpu: 0.0.40
codegen_flags: <defaults>
</compile_context>

<pallas_src>
import functools

import jax
import jax.numpy as jnp
from jax.experimental import pallas as pl
from jax.experimental.pallas import tpu as pltpu

C_IN, C1, C2, C3 = 6, 64, 128, 255
C3_PAD = 256            # lane-dense output width (255 -> 256), sliced back outside
EPS = 1e-5              # nn.BatchNorm1d default


def _round_up(x, m):
    return (x + m - 1) // m * m


# ---------------------------------------------------------------------------
# Pallas kernel: fused (tile_n, 6) @ (6, 256) matmul + running per-batch max
# ---------------------------------------------------------------------------
def _matmul_max_kernel(x_ref, a_ref, c_ref, o_ref, *, tile_n, n_valid):
    n = pl.program_id(1)

    @pl.when(n == 0)
    def _init():
        # output block (1, 1, 256) is resident across the "arbitrary" N axis
        o_ref[...] = jnp.full(o_ref.shape, -jnp.inf, o_ref.dtype)

    xs = x_ref[0]                                            # (tile_n, 6) f32
    y = jnp.dot(xs, a_ref[...], preferred_element_type=jnp.float32) + c_ref[...]

    # mask rows past the true number of points (x was zero-padded to a tile multiple)
    row = n * tile_n + jax.lax.broadcasted_iota(jnp.int32, (tile_n, 1), 0)
    y = jnp.where(row < n_valid, y, -jnp.inf)

    tile_max = jnp.max(y, axis=0, keepdims=True)             # (1, 256)
    o_ref[...] = jnp.maximum(o_ref[...], tile_max[None])     # (1, 1, 256)


def _run_matmul_max(x_bnc, a_eff, c_eff, *, n_valid, tile_n):
    bsz, n_pad, _ = x_bnc.shape
    n_tiles = n_pad // tile_n
    kernel = functools.partial(_matmul_max_kernel, tile_n=tile_n, n_valid=n_valid)
    out = pl.pallas_call(
        kernel,
        out_shape=jax.ShapeDtypeStruct((bsz, 1, C3_PAD), jnp.float32),
        grid_spec=pltpu.PrefetchScalarGridSpec(
            num_scalar_prefetch=0,
            grid=(bsz, n_tiles),
            in_specs=[
                pl.BlockSpec((1, tile_n, C_IN), lambda bi, ni: (bi, ni, 0)),
                pl.BlockSpec((C_IN, C3_PAD), lambda bi, ni: (0, 0)),   # resident weights
                pl.BlockSpec((1, C3_PAD), lambda bi, ni: (0, 0)),      # resident bias
            ],
            out_specs=pl.BlockSpec((1, 1, C3_PAD), lambda bi, ni: (bi, 0, 0)),
        ),
        compiler_params=pltpu.CompilerParams(
            dimension_semantics=("parallel", "arbitrary"),
            vmem_limit_bytes=16 * 1024 * 1024,
        ),
    )(x_bnc, a_eff, c_eff)
    return out[:, 0, :]


# ---------------------------------------------------------------------------
# Fold conv1x1 + train-mode BN stack into a single affine map (tiny math)
# ---------------------------------------------------------------------------
def _fold_stack(params, mu_x, cov_x):
    """With h0 = x and h_k = BN_k(h_{k-1} @ W_k + b_k) (no nonlinearity), every
    h_k is affine in x: h_k = x @ A_k + c_k.  BN batch stats follow from
    mean(x) and Cov(x):
        mean(y_k)  = mu_x @ (A_{k-1} W_k) + c_{k-1} W_k + b_k
        var(y_k)_j = (A_{k-1} W_k)_{:,j}^T Cov(x) (A_{k-1} W_k)_{:,j}  (biased)
    """
    (w1, b1, g1, be1, w2, b2, g2, be2, w3, b3, g3, be3) = params
    a = jnp.eye(C_IN, dtype=jnp.float32)
    c = jnp.zeros((1, C_IN), jnp.float32)
    for w, b, g, be in ((w1, b1, g1, be1), (w2, b2, g2, be2), (w3, b3, g3, be3)):
        aw = a @ w                                            # (6, C_out)
        mu_y = mu_x @ aw + c @ w + b                          # (1, C_out)
        var_y = jnp.einsum("ic,ij,jc->c", aw, cov_x, aw)[None, :]
        scale = g * jax.lax.rsqrt(var_y + EPS)                # gamma / sqrt(var+eps)
        a = aw * scale
        c = (c @ w + b - mu_y) * scale + be
    return a, c                                               # (6, 255), (1, 255)


def pointnet_global_feature(x_npb6, params, *, tile_n=512):
    """x_npb6: (num_points, batch, 6) -- same input convention as the PyTorch
    module.  Returns (batch, 255) global features."""
    # (N, B, 6) -> (B, N, 6) + cast (mirrors transpose/transpose/.float()).
    # x is the only -- and tiny -- tensor that ever touches HBM after the
    # collapse, so this pass is negligible.
    x = jnp.transpose(x_npb6, (1, 0, 2)).astype(jnp.float32)
    bsz, n_pts, _ = x.shape

    # BN statistics of the affine stack: only mean(x) and the 6x6 second
    # moment are needed (one cheap pass over x).
    xf = x.reshape(bsz * n_pts, C_IN)
    mu_x = jnp.mean(xf, axis=0, keepdims=True)                # (1, 6)
    exx = xf.T @ xf / float(bsz * n_pts)                      # (6, 6)
    cov_x = exx - mu_x.T @ mu_x

    a_eff, c_eff = _fold_stack(params, mu_x, cov_x)
    a_eff = jnp.pad(a_eff, ((0, 0), (0, C3_PAD - C3)))        # lane-dense 256
    c_eff = jnp.pad(c_eff, ((0, 0), (0, C3_PAD - C3)))

    tn = _round_up(min(tile_n, _round_up(n_pts, 8)), 8)       # sublane-aligned tile
    n_pad = _round_up(n_pts, tn)
    if n_pad != n_pts:
        x = jnp.pad(x, ((0, 0), (0, n_pad - n_pts), (0, 0)))  # masked in-kernel

    out = _run_matmul_max(x, a_eff, c_eff, n_valid=n_pts, tile_n=tn)
    return out[:, :C3]


# ---------------------------------------------------------------------------
# Synthetic parameters + pure-JAX reference (layer-by-layer) for correctness
# ---------------------------------------------------------------------------
def init_params(key):
    """Conv1d weights kept as (C_in, C_out) (PyTorch (out, in, 1) squeezed+T).
    Biases / BN gamma / BN beta are (1, C)."""
    ks = jax.random.split(key, 12)

    def conv_w(k, cin, cout):
        bound = 1.0 / float(cin) ** 0.5
        return jax.random.uniform(k, (cin, cout), jnp.float32, -bound, bound)

    def vec(k, c, lo, hi):
        return jax.random.uniform(k, (1, c), jnp.float32, lo, hi)

    w1 = conv_w(ks[0], C_IN, C1); b1 = vec(ks[1], C1, -0.1, 0.1)
    g1 = vec(ks[2], C1, 0.5, 1.5); be1 = vec(ks[3], C1, -0.1, 0.1)
    w2 = conv_w(ks[4], C1, C2);   b2 = vec(ks[5], C2, -0.1, 0.1)
    g2 = vec(ks[6], C2, 0.5, 1.5); be2 = vec(ks[7], C2, -0.1, 0.1)
    w3 = conv_w(ks[8], C2, C3);   b3 = vec(ks[9], C3, -0.1, 0.1)
    g3 = vec(ks[10], C3, 0.5, 1.5); be3 = vec(ks[11], C3, -0.1, 0.1)
    return (w1, b1, g1, be1, w2, b2, g2, be2, w3, b3, g3, be3)


def _conv_bn_ref(h, w, b, g, beta):
    y = jnp.einsum("bnc,cd->bnd", h, w) + b
    mean = jnp.mean(y, axis=(0, 1), keepdims=True)               # stats over (B, N)
    var = jnp.mean((y - mean) ** 2, axis=(0, 1), keepdims=True)  # biased variance
    return (y - mean) * jax.lax.rsqrt(var + EPS) * g + beta


def reference(x_npb6, params):
    (w1, b1, g1, be1, w2, b2, g2, be2, w3, b3, g3, be3) = params
    x = jnp.transpose(x_npb6, (1, 0, 2)).astype(jnp.float32)
    h = _conv_bn_ref(x, w1, b1, g1, be1)
    h = _conv_bn_ref(h, w2, b2, g2, be2)
    h = _conv_bn_ref(h, w3, b3, g3, be3)
    return jnp.max(h, axis=1)


if __name__ == "__main__":
    key = jax.random.PRNGKey(0)
    k_x, k_p, k_x2 = jax.random.split(key, 3)

    params = init_params(k_p)

    # Case 1: small, fits one tile.
    num_points, batch = 16, 2
    x = jax.random.normal(k_x, (num_points, batch, C_IN), dtype=jnp.float32)
    out = jax.block_until_ready(pointnet_global_feature(x, params))
    ref = jax.block_until_ready(reference(x, params))
    assert out.shape == (batch, C3), out.shape
    assert jnp.allclose(out, ref, atol=1e-3, rtol=1e-3), float(jnp.max(jnp.abs(out - ref)))

    # Case 2: multi-tile grid, exercises zero-pad masking + running max.
    num_points2, batch2 = 200, 3
    x2 = jax.random.normal(k_x2, (num_points2, batch2, C_IN), dtype=jnp.float32)
    out2 = jax.block_until_ready(pointnet_global_feature(x2, params, tile_n=64))
    ref2 = jax.block_until_ready(reference(x2, params))
    assert out2.shape == (batch2, C3), out2.shape
    assert jnp.allclose(out2, ref2, atol=1e-3, rtol=1e-3), float(jnp.max(jnp.abs(out2 - ref2)))

    print("KERNEL_OK")
</pallas_src>

<mosaic_0001>
module attributes {stable_mosaic.version = 11 : i64} {
  func.func @_matmul_max_kernel(%arg0: i32, %arg1: i32, %arg2: memref<1x16x6xf32, #tpu.memory_space<vmem>>, %arg3: memref<6x256xf32, #tpu.memory_space<vmem>>, %arg4: memref<1x256xf32, #tpu.memory_space<vmem>>, %arg5: memref<1x1x256xf32, #tpu.memory_space<vmem>>) attributes {dimension_semantics = [#tpu.dimension_semantics<parallel>, #tpu.dimension_semantics<arbitrary>], iteration_bounds = array<i64: 2, 1>, scalar_prefetch = 0 : i64, scratch_operands = 0 : i64, tpu.core_type = #tpu.core_type<tc>, window_params = [{transform_indices = @transform_0, window_bounds = array<i64: 1, 16, 6>}, {pipeline_mode = #tpu.pipeline_mode<synchronous>, transform_indices = @transform_1, window_bounds = array<i64: 6, 256>}, {pipeline_mode = #tpu.pipeline_mode<synchronous>, transform_indices = @transform_2, window_bounds = array<i64: 1, 256>}, {transform_indices = @transform_3, window_bounds = array<i64: 1, 1, 256>}]} {
    %c0_i32 = arith.constant 0 : i32
    %0 = arith.cmpi eq, %arg1, %c0_i32 : i32
    %1 = arith.extui %0 : i1 to i32
    %c0_i32_0 = arith.constant 0 : i32
    %2 = arith.cmpi ne, %1, %c0_i32_0 : i32
    scf.if %2 {
      %cst_16 = arith.constant 0xFF800000 : f32
      %26 = vector.broadcast %cst_16 : f32 to vector<1x1x256xf32>
      %c0_17 = arith.constant 0 : index
      %c0_18 = arith.constant 0 : index
      %c0_19 = arith.constant 0 : index
      %27 = vector.load %arg5[%c0_17, %c0_18, %c0_19] : memref<1x1x256xf32, #tpu.memory_space<vmem>>, vector<1x1x256xf32>
      tpu.vector_store %arg5[%c0_17, %c0_18, %c0_19], %26 {strides = array<i32>} : memref<1x1x256xf32, #tpu.memory_space<vmem>>, vector<1x1x256xf32>,
    } else {
    }
    %c0 = arith.constant 0 : index
    %c0_1 = arith.constant 0 : index
    %c0_2 = arith.constant 0 : index
    %3 = vector.load %arg2[%c0, %c0_1, %c0_2] : memref<1x16x6xf32, #tpu.memory_space<vmem>>, vector<1x16x6xf32>
    %4 = vector.shape_cast %3 : vector<1x16x6xf32> to vector<16x6xf32>
    %c0_3 = arith.constant 0 : index
    %c0_4 = arith.constant 0 : index
    %5 = vector.load %arg3[%c0_3, %c0_4] : memref<6x256xf32, #tpu.memory_space<vmem>>, vector<6x256xf32>
    %cst = arith.constant dense<0.000000e+00> : vector<16x256xf32>
    %6 = tpu.matmul %4, %5, %cst {dimension_numbers = #tpu.dot_dimension_numbers<[1], [0], [0], [1], [0, 0, 1, 1], [], []>} : vector<16x6xf32>, vector<6x256xf32>, vector<16x256xf32> -> vector<16x256xf32>
    %c0_5 = arith.constant 0 : index
    %c0_6 = arith.constant 0 : index
    %7 = vector.load %arg4[%c0_5, %c0_6] : memref<1x256xf32, #tpu.memory_space<vmem>>, vector<1x256xf32>
    %8 = vector.broadcast %7 : vector<1x256xf32> to vector<16x256xf32>
    %9 = arith.addf %6, %8 : vector<16x256xf32>
    %c16_i32 = arith.constant 16 : i32
    %10 = arith.muli %arg1, %c16_i32 : i32
    %11 = tpu.iota {dimensions = array<i32: 0>} : vector<16x1xi32>
    %12 = vector.broadcast %10 : i32 to vector<16x1xi32>
    %13 = arith.addi %12, %11 : vector<16x1xi32>
    %c16_i32_7 = arith.constant 16 : i32
    %14 = vector.broadcast %c16_i32_7 : i32 to vector<16x1xi32>
    %15 = arith.cmpi slt, %13, %14 : vector<16x1xi32>
    %cst_8 = arith.constant 0xFF800000 : f32
    %16 = vector.shape_cast %15 : vector<16x1xi1> to vector<16x1xi1>
    %17 = vector.broadcast %16 : vector<16x1xi1> to vector<16x256xi1>
    %18 = vector.broadcast %cst_8 : f32 to vector<16x256xf32>
    %19 = arith.select %17, %9, %18 : vector<16x256xi1>, vector<16x256xf32>
    %cst_9 = arith.constant dense<0xFF800000> : vector<256xf32>
    %20 = vector.multi_reduction <maximumf>, %19, %cst_9 [0] : vector<16x256xf32> to vector<256xf32>
    %21 = vector.shape_cast %20 : vector<256xf32> to vector<1x256xf32>
    %c0_10 = arith.constant 0 : index
    %c0_11 = arith.constant 0 : index
    %c0_12 = arith.constant 0 : index
    %22 = vector.load %arg5[%c0_10, %c0_11, %c0_12] : memref<1x1x256xf32, #tpu.memory_space<vmem>>, vector<1x1x256xf32>
    %23 = vector.shape_cast %21 : vector<1x256xf32> to vector<1x1x256xf32>
    %24 = arith.maximumf %22, %23 : vector<1x1x256xf32>
    %c0_13 = arith.constant 0 : index
    %c0_14 = arith.constant 0 : index
    %c0_15 = arith.constant 0 : index
    %25 = vector.load %arg5[%c0_13, %c0_14, %c0_15] : memref<1x1x256xf32, #tpu.memory_space<vmem>>, vector<1x1x256xf32>
    tpu.vector_store %arg5[%c0_13, %c0_14, %c0_15], %24 {strides = array<i32>} : memref<1x1x256xf32, #tpu.memory_space<vmem>>, vector<1x1x256xf32>,
    return
  }
  func.func @transform_0(%arg0: i32, %arg1: i32) -> (i32, i32, i32) {
    %c0_i32 = arith.constant 0 : i32
    %c0_i32_0 = arith.constant 0 : i32
    return %arg0, %arg1, %c0_i32 : i32, i32, i32
  }
  func.func @transform_1(%arg0: i32, %arg1: i32) -> (i32, i32) {
    %c0_i32 = arith.constant 0 : i32
    %c0_i32_0 = arith.constant 0 : i32
    %c0_i32_1 = arith.constant 0 : i32
    return %c0_i32, %c0_i32_0 : i32, i32
  }
  func.func @transform_2(%arg0: i32, %arg1: i32) -> (i32, i32) {
    %c0_i32 = arith.constant 0 : i32
    %c0_i32_0 = arith.constant 0 : i32
    %c0_i32_1 = arith.constant 0 : i32
    return %c0_i32, %c0_i32_0 : i32, i32
  }
  func.func @transform_3(%arg0: i32, %arg1: i32) -> (i32, i32, i32) {
    %c0_i32 = arith.constant 0 : i32
    %c0_i32_0 = arith.constant 0 : i32
    %c0_i32_1 = arith.constant 0 : i32
    return %arg0, %c0_i32, %c0_i32_0 : i32, i32, i32
  }
}

</mosaic_0001>

<bundles_post_ra>
// kernel: tpu_custom_call.1
= control target key start
LH: loop header
LB: loop body
LE: loop exit
PB: predicated region body
PF: predicated region fallthrough
CT: control target
= control target key end

     0   :  { %8 = vsyncpa [#allocation3], 0  ;;  %s711_s0 = inlined_call_operand.vmem [shape: f32[2,16,6], index: 0, kind: input, shape index: {}]   ;;  %s712_s1 = inlined_call_operand.vmem [shape: f32[6,256], index: 1, kind: input, shape index: {}]   ;;  %s713_s2 = inlined_call_operand.vmem [shape: f32[1,256], index: 2, kind: input, shape index: {}]   ;;  %s714_s3 = inlined_call_operand.hbm [shape: f32[2,1,256], index: 3, kind: output, shape index: {}]  }
   0x1   :  { %10 = vsyncpa [#allocation3 + $0x1], 0  ;;  %s587_s12 = smov 0   ;;  %s589_s13 = smov 0  }
   0x2   :  { %s591_s14 = smov 0   ;;  %s593_s15 = smov 0  }
   0x3   :  { %s595_s16 = smov 0   ;;  %s597_s17 = smov 0  }
   0x4 LB: > { %s409_s18 = sadd.s32 4294967295, %s564_s17   ;;  %s410_s19 = sadd.s32 4294967294, %s564_s17   ;;  %s564_s17 = sphi %s597_s17, %s16_s17   ;;  %s560_s16 = sphi %s595_s16, %s723_s16   ;;  %s556_s15 = sphi %s593_s15, %s722_s15   ;;  %s552_s14 = sphi %s591_s14, %s721_s14   ;;  %s548_s13 = sphi %s589_s13, %s720_s13   ;;  %s544_s12 = sphi %s587_s12, %s719_s12  }
   0x5   : > { %s28_s20 = sadd.s32 1, %s560_s16  ;;  %s105_s21 = sadd.s32 1, %s552_s14 }
   0x6   : > { %p30_p0 = scmp.ge.s32.totalorder %s28_s20, 2  ;;  %p115_p1 = scmp.ne.s32.totalorder %s552_s14, %s548_s13 }
   0x7   : > { %p116_p2 = scmp.eq.s32.totalorder %s409_s18, 1  ;;  %p121_p3 = scmp.ne.s32.totalorder %s548_s13, %s544_s12 }
   0x8   : > { %s725_s20 = smov (%p30_p0, %s28_s20), 0  ;;  %p122_p5 = scmp.eq.s32.totalorder %s410_s19, 1 }
   0x9   : > { %p627_p4 = por %p116_p2, %p115_p1  ;;  %s102_s23 = ssub.s32 %s560_s16, %s725_s20 }
   0xa   : > { %p413_p6 = scmp.ge.s32.totalorder %s564_s17, 1  ;;  %p103_p7 = scmp.eq.s32.totalorder %s102_s23, 0 }
   0xb   : > { %p634_p8 = por %p122_p5, %p121_p3  ;;  %p159_p9 = scmp.lt.s32.totalorder %s564_s17, 3 }
   0xc   : > { %s640_s25 = scalar_select %p103_p7, %s552_s14, %s105_s21  }
   0xd   : > { %p160_p10 = pnand %p413_p6, %p159_p9 }
   0xe   : > { %p188_p11 = scmp.lt.s32.totalorder (!%p160_p10), %s556_s15, 1  ;;  %s184_s8 = sand.u32 (!%p160_p10), 1, %s548_s13  }
   0xf   : > { %163 = sbr.rel (%p160_p10) target bundleno = 181 (0xb5), region = 32  ;;  %s414_s9 = sshll.u32 (!%p160_p10), %s184_s8, 1 }
  0x10   : > { %s660_s10 = scalar_lea.vmem (!%p160_p10), [#allocation2], %s414_s9  ;;  %s424_s19 = sshll.u32 (!%p160_p10), %s556_s15, 1 }
  0x11   : > { %s331_s26 = scalar_lea.hbm (!%p160_p10), %s714_s3, %s424_s19  ;;  %s333_s27 = sshll.u32 (!%p160_p10), %s660_s10, 4  ;;  %s334_s27 = int_to_ptr.vmem [resolvable:$true] %s333_s27 }
  0x12   : > { %s335_s28 = sshll.u32 (!%p160_p10), %s331_s26, 4  ;;  %s506_s6 = scalar_lea.hbm (!%p160_p10), %s714_s3, 4  ;;  %s336_s28 = int_to_ptr.hbm [resolvable:$true] %s335_s28 }
  0x13   : > { %s500_s29 = sshra.s32 (!%p160_p10), %s336_s28, 4  ;;  %s501_s29 = int_to_ptr.hbm [resolvable:$true] %s500_s29 }
  0x14   : > { %v208_v0 = vld [vmem:[%s712_s1] sm:$0x3f]  ;;  %vm223_vm0 = vcmask 1045504   ;;  %v209_v1 = vld [vmem:[%s712_s1 + $0x8] sm:$0x3f]  ;;  %s189_s30 = scalar_select %p188_p11, %s556_s15, 1  ;;  %v201_v4 = vlaneseq }
  0x15   : > { %428 = vmatpush.msk.msra.mxu2 %vm223_vm0, %v208_v0  ;;  %429 = vmatpush.msk.msra.mxu3 %vm223_vm0, %v209_v1  ;;  %vm216_vm1 = vcmask 48128   ;;  %v566_v6 = vmov -inf   ;;  %v210_v7 = vld [vmem:[%s713_s2] sm:$0x3]  ;;  %vm311_vm3 = vcmask 1040384   ;;  %s321_s15 = scalar_lea.sflag [#allocation3], %s184_s8  ;;  %p507_p1 = scmp.lt.s32.totalorder %s501_s29, %s714_s3 }
  0x16   : > { %417 = vmatpush.msk.msra.mxu0 %vm223_vm0, %v208_v0  ;;  %420 = vmatpush.msk.msra.mxu1 %vm223_vm0, %v209_v1  ;;  %s427_s4 = sshll.u32 %s189_s30, 4  ;;  %vm656_vm2 = vcmp.lt.s32.totalorder %v201_v4, 256  ;;  %v212_v8 = vperm.slane %v210_v7, 0  ;;  %v213_v9 = vperm.slane %v210_v7, 1  ;;  %s502_s30 = scalar_lea.hbm %s501_s29, 2 }
  0x17   : > { %s195_s7 = scalar_lea.vmem %s711_s0, %s427_s4  ;;  %205 = vst.msk [vmem:[%s660_s10] sm:$0x3] %vm656_vm2, %v566_v6  ;;  %p503_p12 = scmp.ne.s32.totalorder %s501_s29, %s502_s30 }
  0x18   : > { %v207_v2 = vld [vmem:[%s195_s7 + $0x8] sm:$0xff]  ;;  %v206_v3 = vld [vmem:[%s195_s7] sm:$0xff]  ;;  %p508_p2 = scmp.lt.s32.totalorder %s506_s6, %s502_s30 }
  0x19   : > { %419 = vmatmul.msk.f32.vlgmr.msra.gmra.mxu2 %vm216_vm1, %v207_v2  ;;  %422 = vmatmul.msk.f32.vlgmr.msra.gmra.mxu3 %vm216_vm1, %v207_v2  ;;  %p504_p13 = pnand %p503_p12, %p627_p4 }
  0x1a   : > { %418 = vmatmul.msk.f32.vlgmr.msra.gmra.mxu0 %vm216_vm1, %v206_v3  ;;  %421 = vmatmul.msk.f32.vlgmr.msra.gmra.mxu1 %vm216_vm1, %v206_v3  ;;  %p509_p3 = por %p508_p2, %p507_p1 }
  0x1b   : > { %p505_p0 = pneg %p504_p13 }
  0x1d   : > { %p510_p5 = pnand %p509_p3, %p505_p0 }
  0x1e   : > { %v307_v33 = vld [vmem:[%s660_s10] sm:$0x3] }
  0x97   : > { %v247_v10 = vpop.f32.mrf.mxu0  ;;  %v270_v11 = vpop.f32.mrf.mxu1 }
  0x98   : > { %v248_v12 = vadd.f32 %v247_v10, %v212_v8  ;;  %v271_v13 = vadd.f32 %v270_v11, %v213_v9 }
  0x9c   : > { %v250_v14 = vpop.f32.mrf.mxu2  ;;  %v273_v15 = vpop.f32.mrf.mxu3 }
  0x9d   : > { %v251_v16 = vadd.f32 %v250_v14, %v212_v8  ;;  %v274_v17 = vadd.f32 %v273_v15, %v213_v9 }
  0x9f   : > { %v293_v18 = vmax.f32 %v248_v12, %v251_v16  ;;  %v300_v19 = vmax.f32 %v271_v13, %v274_v17 }
  0xa1   : > { %v294_v20 = vrot.slane %v293_v18, 4  ;;  %v301_v21 = vrot.slane %v300_v19, 4 }
  0xa3   : > { %v295_v22 = vmax.f32 %v293_v18, %v294_v20  ;;  %v302_v23 = vmax.f32 %v300_v19, %v301_v21 }
  0xa5   : > { %v296_v24 = vrot.slane %v295_v22, 2  ;;  %v303_v25 = vrot.slane %v302_v23, 2 }
  0xa7   : > { %v297_v26 = vmax.f32 %v295_v22, %v296_v24  ;;  %v304_v27 = vmax.f32 %v302_v23, %v303_v25 }
  0xa9   : > { %v298_v28 = vrot.slane %v297_v26, 1  ;;  %v305_v29 = vrot.slane %v304_v27, 1 }
  0xab   : > { %v306_v30 = vmax.f32 %v304_v27, %v305_v29  ;;  %v299_v31 = vmax.f32 %v297_v26, %v298_v28 }
  0xad   : > { %v310_v32 = vrot.slane %v306_v30, 7 }
  0xaf   : > { %v312_v34 = vsel %vm311_vm3, %v299_v31, %v310_v32 }
  0xb0   : > { %v314_v35 = vmax.f32 %v307_v33, %v312_v34 }
  0xb2   : > { %319 = vst.msk [vmem:[%s660_s10] sm:$0x3] %vm656_vm2, %v314_v35 }
  0xb3   : > { %513 = shalt.err (!%p510_p5)
}
  0xb4   : > { %430 = dma.vmem_to_hbm [thread:$0]  (%p627_p4), %s334_s27, 32, %s336_s28, %s321_s15  }
  0xb5 PF: > { %p436_p6 = scmp.ge.s32.totalorder %s564_s17, 2  ;;  %s347_s8 = sand.u32 1, %s544_s12  }
  0xb6   : > { %s348_s10 = scalar_lea.sflag [#allocation3], %s347_s8 }
  0xb7   : > { %p433_p7 = pnand %p436_p6, %p634_p8 }
  0xb9   : > { %p434_p9 = pneg %p433_p7 }
  0xbb   : > { %539 = dma.done.wait (%p434_p9), %s348_s10, 32  }
  0xbc   : > { %541 = vsyncadd (%p434_p9), %s348_s10, 4294967264  ;;  %s16_s17 = sadd.s32 1, %s564_s17   ;;  %s719_s12 = smov %s548_s13 }
  0xbd   : > { %p13_p10 = scmp.ge.s32.totalorder %s16_s17, 4   ;;  %s720_s13 = smov %s552_s14 }
  0xbe   : > { %s721_s14 = smov %s640_s25  ;;  %s722_s15 = smov %s560_s16 }
  0xbf   : > { %s723_s16 = smov %s725_s20  ;;  %15 = sbr.rel (!%p13_p10) target bundleno = 4 (0x4), region = 71 }
  0xc4   :  { %354 = vsyncpa [#allocation3], 1 }
  0xc5   :  { %356 = vsyncpa [#allocation3 + $0x1], 1 }

</bundles_post_ra>
